<compile_context>
chip_gen: v7x
topology: tpu7x:2x2x1
jax: 0.10.0
libtpu: 0.0.40
codegen_flags: <defaults>
</compile_context>

<pallas_src>
import math

import jax
import jax.numpy as jnp
from jax.experimental import pallas as pl
from jax.experimental.pallas import tpu as pltpu

# ---- static configuration (module defaults at small shapes) -----------------
B, C_IN, C_OUT, T = 2, 32, 32, 16       # in_channels == out_channels -> identity shortcut
SCALE = 4                               # res2net_scale
HID = C_OUT // SCALE                    # 8 (vreg-sublane aligned)
SE_CH = 16                              # se_channels
EPS = 1e-5                              # BatchNorm eps

# lane-dense packing: pad T to Tp so that B * Tp is a multiple of 128
TP = ((T + (128 // math.gcd(B, 128)) - 1)
      // (128 // math.gcd(B, 128))) * (128 // math.gcd(B, 128))   # 64
LANES = B * TP                                                     # 128

# weight-slab indices (each matrix zero-padded to (C_OUT, C_OUT))
W_TDNN1 = 0
W_RES0 = 1
W_TDNN2 = W_RES0 + (SCALE - 1)          # 4
W_SE1 = W_TDNN2 + 1                     # 5
W_SE2 = W_SE1 + 1                       # 6
N_MATS = W_SE2 + 1                      # 7

# bias/scale/shift slab column layout (each column zero-padded to C_OUT rows)
_VEC_ORDER = (["b1", "s1", "h1"]
              + [f"{p}{i}" for i in range(SCALE - 1) for p in ("br", "sr", "hr")]
              + ["b2", "s2", "h2", "bse1", "bse2"])
VCOL = {name: j for j, name in enumerate(_VEC_ORDER)}
N_VEC = len(_VEC_ORDER)                 # 17


# ---- the fused Pallas kernel (single invocation, whole slab) ------------------
def seres2net_kernel(x_ref, w_ref, v_ref, avg_ref, bcast_ref, out_ref):
    f32 = jnp.float32
    x = x_ref[...]                       # (C_IN, LANES), lane = batch*Tp + time
    residual = x                         # identity shortcut (C_IN == C_OUT)

    def vcol(name, rows=C_OUT):
        j = VCOL[name]
        return v_ref[:rows, j:j + 1]     # (rows, 1) column, broadcasts over lanes

    def tdnn(w, z, b, s, h):
        y = jnp.dot(w, z, preferred_element_type=f32) + b
        return jnp.maximum(y, 0.0) * s + h      # ReLU -> folded eval BatchNorm

    # --- tdnn1: 1x1 conv -> ReLU -> BN ---
    h1 = tdnn(w_ref[W_TDNN1], x, vcol("b1"), vcol("s1"), vcol("h1"))

    # --- Res2Net cascade: chunks stay in vregs; HID=8 keeps them sublane-aligned ---
    ys = []
    y_prev = None
    for i in range(SCALE):
        x_i = h1[i * HID:(i + 1) * HID, :]           # (HID, LANES)
        if i == 0:
            y_i = x_i
        else:
            inp = x_i if i == 1 else x_i + y_prev
            w_i = w_ref[W_RES0 + (i - 1)][:HID, :HID]
            y_i = tdnn(w_i, inp,
                       vcol(f"br{i - 1}", HID),
                       vcol(f"sr{i - 1}", HID),
                       vcol(f"hr{i - 1}", HID))
        ys.append(y_i)
        y_prev = y_i
    res_cat = jnp.concatenate(ys, axis=0)            # (C_OUT, LANES), pure vreg stacking

    # --- tdnn2: 1x1 conv -> ReLU -> BN ---
    h2 = tdnn(w_ref[W_TDNN2], res_cat, vcol("b2"), vcol("s2"), vcol("h2"))

    # --- SE block, narrow path (lengths=None -> per-batch mean over valid t) ---
    # (C_OUT, LANES) @ (LANES, B) -> per-batch means (C_OUT, B)
    s = jnp.dot(h2, avg_ref[...], preferred_element_type=f32)
    # SE weights are zero-padded to (C_OUT, C_OUT); padded rows/cols contribute 0.
    z = jnp.maximum(
        jnp.dot(w_ref[W_SE1], s, preferred_element_type=f32) + vcol("bse1"), 0.0)
    gate = jax.nn.sigmoid(
        jnp.dot(w_ref[W_SE2], z, preferred_element_type=f32) + vcol("bse2"))
    # (C_OUT, B) @ (B, LANES) -> (C_OUT, LANES); bcast carries the valid-time
    # mask, so padded time lanes get gate 0 and the output there is exactly 0.
    gate_full = jnp.dot(gate, bcast_ref[...], preferred_element_type=f32)

    out_ref[...] = gate_full * h2 + residual         # lane-dense (32, 128) store


# ---- host-side parameter packing (2 slabs) ------------------------------------
def pack_params(P):
    def pad_mat(w):
        out = jnp.zeros((C_OUT, C_OUT), jnp.float32)
        return out.at[:w.shape[0], :w.shape[1]].set(w.astype(jnp.float32))

    mats = [pad_mat(P["w1"])]
    mats += [pad_mat(P["wr"][i]) for i in range(SCALE - 1)]
    mats += [pad_mat(P["w2"]), pad_mat(P["wse1"]), pad_mat(P["wse2"])]
    w_slab = jnp.stack(mats, axis=0)                 # (N_MATS, C_OUT, C_OUT)

    def pad_vec(v):
        v = jnp.ravel(v).astype(jnp.float32)
        out = jnp.zeros((C_OUT,), jnp.float32)
        return out.at[:v.shape[0]].set(v)

    vec = {"b1": P["b1"], "s1": P["s1"], "h1": P["h1"],
           "b2": P["b2"], "s2": P["s2"], "h2": P["h2"],
           "bse1": P["bse1"], "bse2": P["bse2"]}
    for i in range(SCALE - 1):
        vec[f"br{i}"] = P["br"][i]
        vec[f"sr{i}"] = P["sr"][i]
        vec[f"hr{i}"] = P["hr"][i]
    v_slab = jnp.stack([pad_vec(vec[n]) for n in _VEC_ORDER], axis=1)  # (C_OUT, N_VEC)
    return w_slab, v_slab


# ---- host-side SE pooling / broadcast constants --------------------------------
def make_se_mats():
    lane = jnp.arange(LANES)
    same_batch = (lane[:, None] // TP) == jnp.arange(B)[None, :]      # (LANES, B)
    valid_time = (lane[:, None] % TP) < T
    onehot = (same_batch & valid_time).astype(jnp.float32)
    avg_mat = onehot / float(T)                       # (LANES, B): per-batch time mean
    bcast_mat = onehot.T                              # (B, LANES): gate broadcast + mask
    return avg_mat, bcast_mat


# ---- wrapper: single pallas_call over the lane-dense slab ---------------------
def seres2net_forward(x, params):
    # unsupported configs must fail loudly (see TODOs at top)
    assert x.shape == (B, C_IN, T), x.shape
    assert C_IN == C_OUT, "shortcut Conv1d (in != out channels) not implemented"
    assert C_OUT % SCALE == 0 and HID % 8 == 0

    w_slab, v_slab = pack_params(params)
    avg_mat, bcast_mat = make_se_mats()

    # (B, C, T) -> (C, B, Tp) -> (C, B*Tp): lane-dense, zero-padded time
    x2 = jnp.transpose(x, (1, 0, 2))
    x2 = jnp.pad(x2, ((0, 0), (0, 0), (0, TP - T)))
    x2 = x2.reshape(C_IN, LANES)

    out2 = pl.pallas_call(
        seres2net_kernel,
        out_shape=jax.ShapeDtypeStruct((C_OUT, LANES), jnp.float32),
        grid=(1,),
        in_specs=[
            pl.BlockSpec((C_IN, LANES), lambda i: (0, 0)),
            pl.BlockSpec((N_MATS, C_OUT, C_OUT), lambda i: (0, 0, 0)),
            pl.BlockSpec((C_OUT, N_VEC), lambda i: (0, 0)),
            pl.BlockSpec((LANES, B), lambda i: (0, 0)),
            pl.BlockSpec((B, LANES), lambda i: (0, 0)),
        ],
        out_specs=pl.BlockSpec((C_OUT, LANES), lambda i: (0, 0)),
        compiler_params=pltpu.CompilerParams(
            dimension_semantics=("parallel",)),
    )(x2, w_slab, v_slab, avg_mat, bcast_mat)

    out = out2.reshape(C_OUT, B, TP)[:, :, :T]
    return jnp.transpose(out, (1, 0, 2))             # (B, C_OUT, T)


# ---- deterministic synthetic parameters ---------------------------------------
def init_params(key):
    keys = iter(jax.random.split(key, 64))           # 34 draws needed; headroom

    def dense(o, i):
        return jax.random.normal(next(keys), (o, i), jnp.float32) / jnp.sqrt(float(i))

    def bias(o):
        return jax.random.normal(next(keys), (o, 1), jnp.float32) * 0.1

    def bn_fold(o):
        gamma = jax.random.uniform(next(keys), (o, 1), jnp.float32, 0.5, 1.5)
        beta = jax.random.normal(next(keys), (o, 1), jnp.float32) * 0.1
        rmean = jax.random.normal(next(keys), (o, 1), jnp.float32) * 0.1
        rvar = jax.random.uniform(next(keys), (o, 1), jnp.float32, 0.5, 1.5)
        scale = gamma / jnp.sqrt(rvar + EPS)
        shift = beta - rmean * scale
        return scale, shift

    P = {}
    P["w1"], P["b1"] = dense(C_OUT, C_IN), bias(C_OUT)
    P["s1"], P["h1"] = bn_fold(C_OUT)

    wr, br, sr, hr = [], [], [], []
    for _ in range(SCALE - 1):
        wr.append(dense(HID, HID))
        br.append(bias(HID))
        s, h = bn_fold(HID)
        sr.append(s)
        hr.append(h)
    P["wr"], P["br"] = jnp.stack(wr), jnp.stack(br)
    P["sr"], P["hr"] = jnp.stack(sr), jnp.stack(hr)

    P["w2"], P["b2"] = dense(C_OUT, C_OUT), bias(C_OUT)
    P["s2"], P["h2"] = bn_fold(C_OUT)

    P["wse1"], P["bse1"] = dense(SE_CH, C_OUT), bias(SE_CH)
    P["wse2"], P["bse2"] = dense(C_OUT, SE_CH), bias(C_OUT)
    return P


# ---- pure-JAX reference (mirrors the PyTorch forward) --------------------------
def ref_forward(x, P):
    def conv1x1(w, b, z):
        return jnp.einsum("oc,bct->bot", w, z) + b[None]

    def bn(z, s, h):
        return z * s[None] + h[None]

    out = bn(jax.nn.relu(conv1x1(P["w1"], P["b1"], x)), P["s1"], P["h1"])

    ys, y_prev = [], None
    for i in range(SCALE):
        x_i = out[:, i * HID:(i + 1) * HID, :]
        if i == 0:
            y_i = x_i
        else:
            inp = x_i if i == 1 else x_i + y_prev
            y_i = bn(jax.nn.relu(conv1x1(P["wr"][i - 1], P["br"][i - 1], inp)),
                     P["sr"][i - 1], P["hr"][i - 1])
        ys.append(y_i)
        y_prev = y_i
    out = jnp.concatenate(ys, axis=1)

    out = bn(jax.nn.relu(conv1x1(P["w2"], P["b2"], out)), P["s2"], P["h2"])

    s = jnp.mean(out, axis=2, keepdims=True)
    s = jax.nn.relu(conv1x1(P["wse1"], P["bse1"], s))
    gate = jax.nn.sigmoid(conv1x1(P["wse2"], P["bse2"], s))
    return gate * out + x


if __name__ == "__main__":
    key = jax.random.PRNGKey(0)
    kx, kp = jax.random.split(key)
    x = jax.random.normal(kx, (B, C_IN, T), jnp.float32)
    params = init_params(kp)

    out = jax.block_until_ready(seres2net_forward(x, params))
    ref = jax.block_until_ready(ref_forward(x, params))

    assert out.shape == (B, C_OUT, T)
    assert jnp.allclose(out, ref, atol=1e-2, rtol=1e-2), float(
        jnp.max(jnp.abs(out - ref)))

    print("KERNEL_OK")
</pallas_src>

<mosaic_0001>
module attributes {stable_mosaic.version = 11 : i64} {
  func.func @seres2net_kernel(%arg0: i32, %arg1: memref<32x128xf32, #tpu.memory_space<vmem>>, %arg2: memref<7x32x32xf32, #tpu.memory_space<vmem>>, %arg3: memref<32x17xf32, #tpu.memory_space<vmem>>, %arg4: memref<128x2xf32, #tpu.memory_space<vmem>>, %arg5: memref<2x128xf32, #tpu.memory_space<vmem>>, %arg6: memref<32x128xf32, #tpu.memory_space<vmem>>) attributes {dimension_semantics = [#tpu.dimension_semantics<parallel>], iteration_bounds = array<i64: 1>, scalar_prefetch = 0 : i64, scratch_operands = 0 : i64, tpu.core_type = #tpu.core_type<tc>, window_params = [{pipeline_mode = #tpu.pipeline_mode<synchronous>, transform_indices = @transform_0, window_bounds = array<i64: 32, 128>}, {pipeline_mode = #tpu.pipeline_mode<synchronous>, transform_indices = @transform_1, window_bounds = array<i64: 7, 32, 32>}, {pipeline_mode = #tpu.pipeline_mode<synchronous>, transform_indices = @transform_2, window_bounds = array<i64: 32, 17>}, {pipeline_mode = #tpu.pipeline_mode<synchronous>, transform_indices = @transform_3, window_bounds = array<i64: 128, 2>}, {pipeline_mode = #tpu.pipeline_mode<synchronous>, transform_indices = @transform_4, window_bounds = array<i64: 2, 128>}, {pipeline_mode = #tpu.pipeline_mode<synchronous>, transform_indices = @transform_5, window_bounds = array<i64: 32, 128>}]} {
    %c0 = arith.constant 0 : index
    %c0_0 = arith.constant 0 : index
    %0 = vector.load %arg1[%c0, %c0_0] : memref<32x128xf32, #tpu.memory_space<vmem>>, vector<32x128xf32>
    %c0_1 = arith.constant 0 : index
    %c0_2 = arith.constant 0 : index
    %c0_3 = arith.constant 0 : index
    %1 = vector.load %arg2[%c0_1, %c0_2, %c0_3] : memref<7x32x32xf32, #tpu.memory_space<vmem>>, vector<1x32x32xf32>
    %2 = vector.shape_cast %1 : vector<1x32x32xf32> to vector<32x32xf32>
    %c0_4 = arith.constant 0 : index
    %c0_5 = arith.constant 0 : index
    %3 = vector.load %arg3[%c0_4, %c0_5] : memref<32x17xf32, #tpu.memory_space<vmem>>, vector<32x1xf32>
    %c0_6 = arith.constant 0 : index
    %c1 = arith.constant 1 : index
    %4 = vector.load %arg3[%c0_6, %c1] : memref<32x17xf32, #tpu.memory_space<vmem>>, vector<32x1xf32>
    %c0_7 = arith.constant 0 : index
    %c2 = arith.constant 2 : index
    %5 = vector.load %arg3[%c0_7, %c2] : memref<32x17xf32, #tpu.memory_space<vmem>>, vector<32x1xf32>
    %cst = arith.constant dense<0.000000e+00> : vector<32x128xf32>
    %6 = tpu.matmul %2, %0, %cst {dimension_numbers = #tpu.dot_dimension_numbers<[1], [0], [0], [1], [0, 0, 1, 1], [], []>} : vector<32x32xf32>, vector<32x128xf32>, vector<32x128xf32> -> vector<32x128xf32>
    %7 = vector.broadcast %3 : vector<32x1xf32> to vector<32x128xf32>
    %8 = arith.addf %6, %7 : vector<32x128xf32>
    %cst_8 = arith.constant 0.000000e+00 : f32
    %9 = vector.broadcast %cst_8 : f32 to vector<32x128xf32>
    %10 = arith.maximumf %8, %9 : vector<32x128xf32>
    %11 = vector.broadcast %4 : vector<32x1xf32> to vector<32x128xf32>
    %12 = arith.mulf %10, %11 : vector<32x128xf32>
    %13 = vector.broadcast %5 : vector<32x1xf32> to vector<32x128xf32>
    %14 = arith.addf %12, %13 : vector<32x128xf32>
    %15 = vector.extract_strided_slice %14 {offsets = [0, 0], sizes = [8, 128], strides = [1, 1]} : vector<32x128xf32> to vector<8x128xf32>
    %16 = vector.extract_strided_slice %14 {offsets = [8, 0], sizes = [8, 128], strides = [1, 1]} : vector<32x128xf32> to vector<8x128xf32>
    %c1_9 = arith.constant 1 : index
    %c0_10 = arith.constant 0 : index
    %c0_11 = arith.constant 0 : index
    %17 = vector.load %arg2[%c1_9, %c0_10, %c0_11] : memref<7x32x32xf32, #tpu.memory_space<vmem>>, vector<1x32x32xf32>
    %18 = vector.shape_cast %17 : vector<1x32x32xf32> to vector<32x32xf32>
    %19 = vector.extract_strided_slice %18 {offsets = [0, 0], sizes = [8, 8], strides = [1, 1]} : vector<32x32xf32> to vector<8x8xf32>
    %c0_12 = arith.constant 0 : index
    %c3 = arith.constant 3 : index
    %20 = vector.load %arg3[%c0_12, %c3] : memref<32x17xf32, #tpu.memory_space<vmem>>, vector<8x1xf32>
    %c0_13 = arith.constant 0 : index
    %c4 = arith.constant 4 : index
    %21 = vector.load %arg3[%c0_13, %c4] : memref<32x17xf32, #tpu.memory_space<vmem>>, vector<8x1xf32>
    %c0_14 = arith.constant 0 : index
    %c5 = arith.constant 5 : index
    %22 = vector.load %arg3[%c0_14, %c5] : memref<32x17xf32, #tpu.memory_space<vmem>>, vector<8x1xf32>
    %cst_15 = arith.constant dense<0.000000e+00> : vector<8x128xf32>
    %23 = tpu.matmul %19, %16, %cst_15 {dimension_numbers = #tpu.dot_dimension_numbers<[1], [0], [0], [1], [0, 0, 1, 1], [], []>} : vector<8x8xf32>, vector<8x128xf32>, vector<8x128xf32> -> vector<8x128xf32>
    %24 = vector.broadcast %20 : vector<8x1xf32> to vector<8x128xf32>
    %25 = arith.addf %23, %24 : vector<8x128xf32>
    %cst_16 = arith.constant 0.000000e+00 : f32
    %26 = vector.broadcast %cst_16 : f32 to vector<8x128xf32>
    %27 = arith.maximumf %25, %26 : vector<8x128xf32>
    %28 = vector.broadcast %21 : vector<8x1xf32> to vector<8x128xf32>
    %29 = arith.mulf %27, %28 : vector<8x128xf32>
    %30 = vector.broadcast %22 : vector<8x1xf32> to vector<8x128xf32>
    %31 = arith.addf %29, %30 : vector<8x128xf32>
    %32 = vector.extract_strided_slice %14 {offsets = [16, 0], sizes = [8, 128], strides = [1, 1]} : vector<32x128xf32> to vector<8x128xf32>
    %33 = arith.addf %32, %31 : vector<8x128xf32>
    %c2_17 = arith.constant 2 : index
    %c0_18 = arith.constant 0 : index
    %c0_19 = arith.constant 0 : index
    %34 = vector.load %arg2[%c2_17, %c0_18, %c0_19] : memref<7x32x32xf32, #tpu.memory_space<vmem>>, vector<1x32x32xf32>
    %35 = vector.shape_cast %34 : vector<1x32x32xf32> to vector<32x32xf32>
    %36 = vector.extract_strided_slice %35 {offsets = [0, 0], sizes = [8, 8], strides = [1, 1]} : vector<32x32xf32> to vector<8x8xf32>
    %c0_20 = arith.constant 0 : index
    %c6 = arith.constant 6 : index
    %37 = vector.load %arg3[%c0_20, %c6] : memref<32x17xf32, #tpu.memory_space<vmem>>, vector<8x1xf32>
    %c0_21 = arith.constant 0 : index
    %c7 = arith.constant 7 : index
    %38 = vector.load %arg3[%c0_21, %c7] : memref<32x17xf32, #tpu.memory_space<vmem>>, vector<8x1xf32>
    %c0_22 = arith.constant 0 : index
    %c8 = arith.constant 8 : index
    %39 = vector.load %arg3[%c0_22, %c8] : memref<32x17xf32, #tpu.memory_space<vmem>>, vector<8x1xf32>
    %cst_23 = arith.constant dense<0.000000e+00> : vector<8x128xf32>
    %40 = tpu.matmul %36, %33, %cst_23 {dimension_numbers = #tpu.dot_dimension_numbers<[1], [0], [0], [1], [0, 0, 1, 1], [], []>} : vector<8x8xf32>, vector<8x128xf32>, vector<8x128xf32> -> vector<8x128xf32>
    %41 = vector.broadcast %37 : vector<8x1xf32> to vector<8x128xf32>
    %42 = arith.addf %40, %41 : vector<8x128xf32>
    %cst_24 = arith.constant 0.000000e+00 : f32
    %43 = vector.broadcast %cst_24 : f32 to vector<8x128xf32>
    %44 = arith.maximumf %42, %43 : vector<8x128xf32>
    %45 = vector.broadcast %38 : vector<8x1xf32> to vector<8x128xf32>
    %46 = arith.mulf %44, %45 : vector<8x128xf32>
    %47 = vector.broadcast %39 : vector<8x1xf32> to vector<8x128xf32>
    %48 = arith.addf %46, %47 : vector<8x128xf32>
    %49 = vector.extract_strided_slice %14 {offsets = [24, 0], sizes = [8, 128], strides = [1, 1]} : vector<32x128xf32> to vector<8x128xf32>
    %50 = arith.addf %49, %48 : vector<8x128xf32>
    %c3_25 = arith.constant 3 : index
    %c0_26 = arith.constant 0 : index
    %c0_27 = arith.constant 0 : index
    %51 = vector.load %arg2[%c3_25, %c0_26, %c0_27] : memref<7x32x32xf32, #tpu.memory_space<vmem>>, vector<1x32x32xf32>
    %52 = vector.shape_cast %51 : vector<1x32x32xf32> to vector<32x32xf32>
    %53 = vector.extract_strided_slice %52 {offsets = [0, 0], sizes = [8, 8], strides = [1, 1]} : vector<32x32xf32> to vector<8x8xf32>
    %c0_28 = arith.constant 0 : index
    %c9 = arith.constant 9 : index
    %54 = vector.load %arg3[%c0_28, %c9] : memref<32x17xf32, #tpu.memory_space<vmem>>, vector<8x1xf32>
    %c0_29 = arith.constant 0 : index
    %c10 = arith.constant 10 : index
    %55 = vector.load %arg3[%c0_29, %c10] : memref<32x17xf32, #tpu.memory_space<vmem>>, vector<8x1xf32>
    %c0_30 = arith.constant 0 : index
    %c11 = arith.constant 11 : index
    %56 = vector.load %arg3[%c0_30, %c11] : memref<32x17xf32, #tpu.memory_space<vmem>>, vector<8x1xf32>
    %cst_31 = arith.constant dense<0.000000e+00> : vector<8x128xf32>
    %57 = tpu.matmul %53, %50, %cst_31 {dimension_numbers = #tpu.dot_dimension_numbers<[1], [0], [0], [1], [0, 0, 1, 1], [], []>} : vector<8x8xf32>, vector<8x128xf32>, vector<8x128xf32> -> vector<8x128xf32>
    %58 = vector.broadcast %54 : vector<8x1xf32> to vector<8x128xf32>
    %59 = arith.addf %57, %58 : vector<8x128xf32>
    %cst_32 = arith.constant 0.000000e+00 : f32
    %60 = vector.broadcast %cst_32 : f32 to vector<8x128xf32>
    %61 = arith.maximumf %59, %60 : vector<8x128xf32>
    %62 = vector.broadcast %55 : vector<8x1xf32> to vector<8x128xf32>
    %63 = arith.mulf %61, %62 : vector<8x128xf32>
    %64 = vector.broadcast %56 : vector<8x1xf32> to vector<8x128xf32>
    %65 = arith.addf %63, %64 : vector<8x128xf32>
    %66 = tpu.concatenate %15, %31, %48, %65 in 0 : vector<8x128xf32>, vector<8x128xf32>, vector<8x128xf32>, vector<8x128xf32> -> vector<32x128xf32>
    %c4_33 = arith.constant 4 : index
    %c0_34 = arith.constant 0 : index
    %c0_35 = arith.constant 0 : index
    %67 = vector.load %arg2[%c4_33, %c0_34, %c0_35] : memref<7x32x32xf32, #tpu.memory_space<vmem>>, vector<1x32x32xf32>
    %68 = vector.shape_cast %67 : vector<1x32x32xf32> to vector<32x32xf32>
    %c0_36 = arith.constant 0 : index
    %c12 = arith.constant 12 : index
    %69 = vector.load %arg3[%c0_36, %c12] : memref<32x17xf32, #tpu.memory_space<vmem>>, vector<32x1xf32>
    %c0_37 = arith.constant 0 : index
    %c13 = arith.constant 13 : index
    %70 = vector.load %arg3[%c0_37, %c13] : memref<32x17xf32, #tpu.memory_space<vmem>>, vector<32x1xf32>
    %c0_38 = arith.constant 0 : index
    %c14 = arith.constant 14 : index
    %71 = vector.load %arg3[%c0_38, %c14] : memref<32x17xf32, #tpu.memory_space<vmem>>, vector<32x1xf32>
    %cst_39 = arith.constant dense<0.000000e+00> : vector<32x128xf32>
    %72 = tpu.matmul %68, %66, %cst_39 {dimension_numbers = #tpu.dot_dimension_numbers<[1], [0], [0], [1], [0, 0, 1, 1], [], []>} : vector<32x32xf32>, vector<32x128xf32>, vector<32x128xf32> -> vector<32x128xf32>
    %73 = vector.broadcast %69 : vector<32x1xf32> to vector<32x128xf32>
    %74 = arith.addf %72, %73 : vector<32x128xf32>
    %cst_40 = arith.constant 0.000000e+00 : f32
    %75 = vector.broadcast %cst_40 : f32 to vector<32x128xf32>
    %76 = arith.maximumf %74, %75 : vector<32x128xf32>
    %77 = vector.broadcast %70 : vector<32x1xf32> to vector<32x128xf32>
    %78 = arith.mulf %76, %77 : vector<32x128xf32>
    %79 = vector.broadcast %71 : vector<32x1xf32> to vector<32x128xf32>
    %80 = arith.addf %78, %79 : vector<32x128xf32>
    %c0_41 = arith.constant 0 : index
    %c0_42 = arith.constant 0 : index
    %81 = vector.load %arg4[%c0_41, %c0_42] : memref<128x2xf32, #tpu.memory_space<vmem>>, vector<128x2xf32>
    %cst_43 = arith.constant dense<0.000000e+00> : vector<32x2xf32>
    %82 = tpu.matmul %80, %81, %cst_43 {dimension_numbers = #tpu.dot_dimension_numbers<[1], [0], [0], [1], [0, 0, 1, 1], [], []>} : vector<32x128xf32>, vector<128x2xf32>, vector<32x2xf32> -> vector<32x2xf32>
    %c5_44 = arith.constant 5 : index
    %c0_45 = arith.constant 0 : index
    %c0_46 = arith.constant 0 : index
    %83 = vector.load %arg2[%c5_44, %c0_45, %c0_46] : memref<7x32x32xf32, #tpu.memory_space<vmem>>, vector<1x32x32xf32>
    %84 = vector.shape_cast %83 : vector<1x32x32xf32> to vector<32x32xf32>
    %cst_47 = arith.constant dense<0.000000e+00> : vector<32x2xf32>
    %85 = tpu.matmul %84, %82, %cst_47 {dimension_numbers = #tpu.dot_dimension_numbers<[1], [0], [0], [1], [0, 0, 1, 1], [], []>} : vector<32x32xf32>, vector<32x2xf32>, vector<32x2xf32> -> vector<32x2xf32>
    %c0_48 = arith.constant 0 : index
    %c15 = arith.constant 15 : index
    %86 = vector.load %arg3[%c0_48, %c15] : memref<32x17xf32, #tpu.memory_space<vmem>>, vector<32x1xf32>
    %87 = vector.broadcast %86 : vector<32x1xf32> to vector<32x2xf32>
    %88 = arith.addf %85, %87 : vector<32x2xf32>
    %cst_49 = arith.constant 0.000000e+00 : f32
    %89 = vector.broadcast %cst_49 : f32 to vector<32x2xf32>
    %90 = arith.maximumf %88, %89 : vector<32x2xf32>
    %c6_50 = arith.constant 6 : index
    %c0_51 = arith.constant 0 : index
    %c0_52 = arith.constant 0 : index
    %91 = vector.load %arg2[%c6_50, %c0_51, %c0_52] : memref<7x32x32xf32, #tpu.memory_space<vmem>>, vector<1x32x32xf32>
    %92 = vector.shape_cast %91 : vector<1x32x32xf32> to vector<32x32xf32>
    %cst_53 = arith.constant dense<0.000000e+00> : vector<32x2xf32>
    %93 = tpu.matmul %92, %90, %cst_53 {dimension_numbers = #tpu.dot_dimension_numbers<[1], [0], [0], [1], [0, 0, 1, 1], [], []>} : vector<32x32xf32>, vector<32x2xf32>, vector<32x2xf32> -> vector<32x2xf32>
    %c0_54 = arith.constant 0 : index
    %c16 = arith.constant 16 : index
    %94 = vector.load %arg3[%c0_54, %c16] : memref<32x17xf32, #tpu.memory_space<vmem>>, vector<32x1xf32>
    %95 = vector.broadcast %94 : vector<32x1xf32> to vector<32x2xf32>
    %96 = arith.addf %93, %95 : vector<32x2xf32>
    %97 = arith.negf %96 : vector<32x2xf32>
    %98 = math.exp %97 : vector<32x2xf32>
    %cst_55 = arith.constant 1.000000e+00 : f32
    %99 = vector.broadcast %cst_55 : f32 to vector<32x2xf32>
    %100 = arith.addf %99, %98 : vector<32x2xf32>
    %101 = arith.divf %99, %100 : vector<32x2xf32>
    %c0_56 = arith.constant 0 : index
    %c0_57 = arith.constant 0 : index
    %102 = vector.load %arg5[%c0_56, %c0_57] : memref<2x128xf32, #tpu.memory_space<vmem>>, vector<2x128xf32>
    %cst_58 = arith.constant dense<0.000000e+00> : vector<32x128xf32>
    %103 = tpu.matmul %101, %102, %cst_58 {dimension_numbers = #tpu.dot_dimension_numbers<[1], [0], [0], [1], [0, 0, 1, 1], [], []>} : vector<32x2xf32>, vector<2x128xf32>, vector<32x128xf32> -> vector<32x128xf32>
    %104 = arith.mulf %103, %80 : vector<32x128xf32>
    %105 = arith.addf %104, %0 : vector<32x128xf32>
    %c0_59 = arith.constant 0 : index
    %c0_60 = arith.constant 0 : index
    %106 = vector.load %arg6[%c0_59, %c0_60] : memref<32x128xf32, #tpu.memory_space<vmem>>, vector<32x128xf32>
    tpu.vector_store %arg6[%c0_59, %c0_60], %105 {strides = array<i32>} : memref<32x128xf32, #tpu.memory_space<vmem>>, vector<32x128xf32>,
    return
  }
  func.func @transform_0(%arg0: i32) -> (i32, i32) {
    %c0_i32 = arith.constant 0 : i32
    %c0_i32_0 = arith.constant 0 : i32
    %c0_i32_1 = arith.constant 0 : i32
    return %c0_i32, %c0_i32_0 : i32, i32
  }
  func.func @transform_1(%arg0: i32) -> (i32, i32, i32) {
    %c0_i32 = arith.constant 0 : i32
    %c0_i32_0 = arith.constant 0 : i32
    %c0_i32_1 = arith.constant 0 : i32
    %c0_i32_2 = arith.constant 0 : i32
    return %c0_i32, %c0_i32_0, %c0_i32_1 : i32, i32, i32
  }
  func.func @transform_2(%arg0: i32) -> (i32, i32) {
    %c0_i32 = arith.constant 0 : i32
    %c0_i32_0 = arith.constant 0 : i32
    %c0_i32_1 = arith.constant 0 : i32
    return %c0_i32, %c0_i32_0 : i32, i32
  }
  func.func @transform_3(%arg0: i32) -> (i32, i32) {
    %c0_i32 = arith.constant 0 : i32
    %c0_i32_0 = arith.constant 0 : i32
    %c0_i32_1 = arith.constant 0 : i32
    return %c0_i32, %c0_i32_0 : i32, i32
  }
  func.func @transform_4(%arg0: i32) -> (i32, i32) {
    %c0_i32 = arith.constant 0 : i32
    %c0_i32_0 = arith.constant 0 : i32
    %c0_i32_1 = arith.constant 0 : i32
    return %c0_i32, %c0_i32_0 : i32, i32
  }
  func.func @transform_5(%arg0: i32) -> (i32, i32) {
    %c0_i32 = arith.constant 0 : i32
    %c0_i32_0 = arith.constant 0 : i32
    %c0_i32_1 = arith.constant 0 : i32
    return %c0_i32, %c0_i32_0 : i32, i32
  }
}

</mosaic_0001>

<bundles_post_ra>
// kernel: tpu_custom_call.1
= control target key start
LH: loop header
LB: loop body
LE: loop exit
PB: predicated region body
PF: predicated region fallthrough
CT: control target
= control target key end

     0   :  { %10 = vsyncpa [#allocation3], 0  ;;  %s1806_s0 = inlined_call_operand.vmem [shape: f32[32,128], index: 0, kind: input, shape index: {}]   ;;  %s1807_s1 = inlined_call_operand.hbm [shape: f32[7,32,32], index: 1, kind: input, shape index: {}]   ;;  %s1808_s2 = inlined_call_operand.vmem [shape: f32[32,17], index: 2, kind: input, shape index: {}]   ;;  %s1809_s3 = inlined_call_operand.vmem [shape: f32[128,2], index: 3, kind: input, shape index: {}]   ;;  %s1810_s4 = inlined_call_operand.vmem [shape: f32[2,128], index: 4, kind: input, shape index: {}]   ;;  %s1811_s5 = inlined_call_operand.hbm [shape: f32[32,128], index: 5, kind: output, shape index: {}]  }
   0x1   :  { %11 = vsyncpa [#allocation4], 0  ;;  %s1534_s18 = smov [#allocation2]   ;;  %s1486_s22 = scalar_lea.hbm %s1807_s1, 3584 }
   0x2   :  { %s19_s19 = sshll.u32 %s1534_s18, 4  ;;  %p1487_p0 = scmp.ne.s32.totalorder %s1807_s1, %s1486_s22  ;;  %s20_s19 = int_to_ptr.vmem [resolvable:$true] %s19_s19 }
   0x3   :  { %p1490_p1 = scmp.lt.u32.totalorder %s1486_s22, %s1807_s1 }
   0x5   :  { %p1492_p2 = pnand %p1490_p1, %p1487_p0 }
   0x7   :  { %1495 = shalt.err (!%p1492_p2)
}
   0x8   :  { %s1496_s27 = scalar_lea.vmem %s20_s19, 3584  ;;  %p1501_p4 = scmp.lt.s32.totalorder %s20_s19, %s20_s19 }
   0x9   :  { %p1497_p3 = scmp.ne.s32.totalorder %s20_s19, %s1496_s27  ;;  %p1502_p5 = scmp.lt.s32.totalorder %s1496_s27, %s1496_s27 }
   0xb   :  { %p1503_p6 = por %p1502_p5, %p1501_p4 }
   0xd   :  { %p1504_p7 = pnand %p1503_p6, %p1497_p3 }
   0xf   :  { %1507 = shalt.err (!%p1504_p7)
}
  0x10   :  { %s1535_s28 = smov 128   ;;  %s1536_s29 = smov 8  }
  0x11   :  { %25 = dma.hbm_to_vmem [thread:$0]  %s1807_s1, 3584, %s20_s19, [#allocation3], %s1535_s28, %s1535_s28, %s1536_s29  }
  0x12   :  { %1530 = dma.done.wait [#allocation3], 3584  }
  0x13   :  { %1531 = vsyncadd [#allocation3], 4294963712  ;;  %v1537_v0 = vmov 2   ;;  %v1538_v1 = vmov 0   ;;  %vm67_vm0 = vcmask 261120   ;;  %v1606_v2 = vld [vmem:[%s1806_s0] sm:$0xff] }
  0x14   :  { %1440 = vset.pattern.permute.xlu1 %v1537_v0  ;;  %1438 = vset.pattern.permute.xlu0 %v1538_v1  ;;  %v1611_v3 = vld [vmem:[%s1806_s0 + $0x8] sm:$0xff]  ;;  %v1616_v4 = vld [vmem:[%s1806_s0 + $0x10] sm:$0xff]  ;;  %v1623_v6 = vld [vmem:[%s1806_s0 + $0x18] sm:$0xff]  ;;  %v1539_v13 = vmov 1   ;;  %v1540_v16 = vmov 3   ;;  %v1541_v17 = vmov 4  }
  0x15   :  { %v1351_v5 = vpack.c.bf16 %v1611_v3, %v1606_v2  ;;  %v39_v7 = vld [vmem:[#allocation2] sm:$0xff]  ;;  %v1355_v8 = vpack.c.bf16 %v1623_v6, %v1616_v4  ;;  %v1631_v9 = vld [vmem:[%s1808_s2 + $0x8] sm:$0xff]  ;;  %v1638_v10 = vld [vmem:[%s1808_s2 + $0x10] sm:$0xff]  ;;  %v1542_v18 = vmov 5   ;;  %v1543_v19 = vmov 6  }
  0x16   :  { %1242 = vmatprep.mubr.msk.f32.mxu0 %vm67_vm0, %v39_v7  ;;  %194 = vperm.xlu1 %1440, %v1631_v9   ;;  %v40_v11 = vld [vmem:[#allocation2 + $0x8] sm:$0xff]  ;;  %v41_v12 = vld [vmem:[#allocation2 + $0x10] sm:$0xff]  ;;  %v1644_v14 = vld [vmem:[%s1808_s2] sm:$0xff]  ;;  %v1544_v21 = vmov 7   ;;  %v1545_v22 = vmov 8   ;;  %v1546_v23 = vmov 9  }
  0x17   :  { %1352 = vmatprep.subr.bf16.mxu0 %v1351_v5  ;;  %54 = vperm.xlu0 %1438, %v1631_v9   ;;  %v42_v15 = vld [vmem:[#allocation2 + $0x18] sm:$0xff]  ;;  %v1547_v24 = vmov 0.0   ;;  %vm1548_vm1 = vmmov 0   ;;  %v210_v36 = vld [vmem:[#allocation2 + $0x20] sm:$0xff]  ;;  %vm217_vm2 = vcmask 64512   ;;  %vm1025_vm3 = vcmask 1041408  }
  0x18   :  { %1354 = vmatpush3.bf16.msra.mxu0 %v1351_v5  ;;  %v1660_v20 = vld [vmem:[%s1808_s2 + $0x18] sm:$0xff]  ;;  %1248 = vmatprep.subr.mxu1 %v1547_v24  ;;  %vm1012_vm4 = vcmask 15360  }
  0x19   :  { %1356 = vmatprep.subr.bf16.mxu0 %v1355_v8  ;;  %1250 = vmatprep.mubr.msk.f32.mxu1 %vm1548_vm1, %v1547_v24 }
  0x1a   :  { %1441 = vset.pattern.permute.xlu1 %v1538_v1 }
  0x1b   :  { %59 = vperm.xlu1 %1441, %v1638_v10   ;;  %1439 = vset.pattern.permute.xlu0 %v1539_v13 }
  0x1c   :  { %1358 = vmatpush3.bf16.msra.mxu0 %v1355_v8  ;;  %174 = vperm.xlu0 %1439, %v1631_v9  }
  0x1f   :  { %1243 = vmatmul.mubr.msk.f32.vlgmr.msra.gmra.mrb[0].mxu0 %vm67_vm0, %v40_v11  ;;  %1442 = vset.pattern.permute.xlu1 %v1540_v16  ;;  %v304_v11 = vld [vmem:[#allocation2 + $0x40] sm:$0xff] }
  0x20   :  { %1245 = vmatprep.mubr.msk.f32.mxu0 %vm67_vm0, %v41_v12  ;;  %214 = vperm.xlu1 %1442, %v1644_v14   ;;  %v1549_v12 = vmov 10  }
  0x21   :  { %178 = vperm.xlu0 %1439, %v1638_v10  }
  0x23   :  { %1246 = vmatmul.mubr.msk.f32.gmra.mrb[2].mxu0 %vm67_vm0, %v42_v15 }
  0x24   :  { %1443 = vset.pattern.permute.xlu1 %v1541_v17 }
  0x25   :  { %293 = vperm.xlu1 %1443, %v1644_v14   ;;  %1444 = vset.pattern.permute.xlu0 %v1537_v0 }
  0x26   :  { %198 = vperm.xlu0 %1444, %v1638_v10  }
  0x29   :  { %1445 = vset.pattern.permute.xlu1 %v1542_v18 }
  0x2a   :  { %298 = vperm.xlu1 %1445, %v1644_v14   ;;  %1447 = vset.pattern.permute.xlu0 %v1543_v19 }
  0x2b   :  { %306 = vperm.xlu0 %1447, %v1644_v14  }
  0x2e   :  { %1446 = vset.pattern.permute.xlu1 %v1538_v1 }
  0x2f   :  { %64 = vperm.xlu1 %1446, %v1660_v20   ;;  %1450 = vset.pattern.permute.xlu0 %v1537_v0 }
  0x30   :  { %202 = vperm.xlu0 %1450, %v1660_v20  }
  0x33   :  { %1448 = vset.pattern.permute.xlu1 %v1539_v13 }
  0x34   :  { %182 = vperm.xlu1 %1448, %v1660_v20   ;;  %1453 = vset.pattern.permute.xlu0 %v1539_v13  ;;  %v1550_v13 = vmov 11  }
  0x35   :  { %170 = vperm.xlu0 %1453, %v1644_v14  }
  0x38   :  { %1449 = vset.pattern.permute.xlu1 %v1544_v21 }
  0x39   :  { %384 = vperm.xlu1 %1449, %v1644_v14   ;;  %1456 = vset.pattern.permute.xlu0 %v1549_v12 }
  0x3a   :  { %475 = vperm.xlu0 %1456, %v1644_v14  }
  0x3d   :  { %1451 = vset.pattern.permute.xlu1 %v1545_v22 }
  0x3e   :  { %389 = vperm.xlu1 %1451, %v1644_v14  }
  0x42   :  { %1452 = vset.pattern.permute.xlu1 %v1538_v1 }
  0x43   :  { %49 = vperm.xlu1 %1452, %v1644_v14  }
  0x47   :  { %1454 = vset.pattern.permute.xlu1 %v1546_v23 }
  0x48   :  { %397 = vperm.xlu1 %1454, %v1644_v14  }
  0x4c   :  { %1455 = vset.pattern.permute.xlu1 %v1537_v0 }
  0x4d   :  { %190 = vperm.xlu1 %1455, %v1644_v14  }
  0x51   :  { %1457 = vset.pattern.permute.xlu1 %v1550_v13 }
  0x52   :  { %480 = vperm.xlu1 %1457, %v1644_v14  }
  0x95   :  { %v195_v34 = vpop.permute.xlu1 %194 }
  0x96   :  { %v55_v25 = vpop.permute.xlu0 %54 }
  0x9a   :  { %v60_v37 = vpop.permute.xlu1 %59 }
  0x9b   :  { %v175_v30 = vpop.permute.xlu0 %174 }
  0x9f   :  { %v215_v38 = vpop.permute.xlu1 %214 }
  0xa0   :  { %v179_v43 = vpop.permute.xlu0 %178 }
  0xa4   :  { %v294_v39 = vpop.permute.xlu1 %293 }
  0xa5   :  { %v199_v45 = vpop.permute.xlu0 %198 }
  0xa9   :  { %v299_v40 = vpop.permute.xlu1 %298 }
  0xaa   :  { %v307_v47 = vpop.permute.xlu0 %306 }
  0xae   :  { %v65_v41 = vpop.permute.xlu1 %64 }
  0xaf   :  { %v203_v49 = vpop.permute.xlu0 %202 }
  0xb3   :  { %v183_v42 = vpop.permute.xlu1 %182 }
  0xb4   :  { %v171_v55 = vpop.permute.xlu0 %170 }
  0xb8   :  { %v385_v44 = vpop.permute.xlu1 %384 }
  0xbd   :  { %v390_v46 = vpop.permute.xlu1 %389 }
  0xc2   :  { %v50_v48 = vpop.permute.xlu1 %49 }
  0xc7   :  { %v1676_v52 = vpop.permute.xlu1 %397 }
  0xcc   :  { %v191_v62 = vpop.permute.xlu1 %190 }
  0xf2   :  { %v1244_v26 = vpop.f32.mrb[0].mxu0 }
  0xf3   :  { %v152_v27 = vadd.f32 %v1244_v26, %v55_v25  ;;  %v146_v28 = vpop.f32.mrb[1].mxu0 }
  0xf4   :  { %v147_v50 = vadd.f32 %v146_v28, %v50_v48  ;;  %v485_v28 = vld [vmem:[#allocation2 + $0x80] sm:$0xff]  ;;  %v657_v48 = vld [vmem:[%s1809_s3 + $0x58] sm:$0xff] }
  0xf5   :  { %v166_v29 = vmax.f32 %v152_v27, 0.0  ;;  %v395_v27 = vld [vmem:[#allocation2 + $0x60] sm:$0xff]  ;;  %1271 = vmatprep.mubr.msk.f32.mxu0 %vm67_vm0, %v485_v28 }
  0xf6   :  { %v1247_v31 = vpop.f32.mrb[2].mxu0  ;;  %v165_v53 = vmax.f32 %v147_v50, 0.0 }
  0xf7   :  { %v186_v32 = vmul.f32 %v175_v30, %v166_v29  ;;  %v156_v33 = vpop.f32.mrb[3].mxu0  ;;  %v162_v15 = vadd.f32 %v1247_v31, %v65_v41  ;;  %v1551_v29 = vmov 12   ;;  %v646_v30 = vld [vmem:[%s1809_s3] sm:$0xff]  ;;  %v647_v31 = vld [vmem:[%s1809_s3 + $0x8] sm:$0xff]  ;;  %v652_v41 = vld [vmem:[%s1809_s3 + $0x30] sm:$0xff] }
  0xf8   :  { %v157_v51 = vadd.f32 %v156_v33, %v60_v37  ;;  %v185_v59 = vmul.f32 %v171_v55, %v165_v53  ;;  %1458 = vset.pattern.permute.xlu1 %v1551_v29  ;;  %1459 = vset.pattern.permute.xlu0 %v1551_v29  ;;  %v648_v33 = vld [vmem:[%s1809_s3 + $0x10] sm:$0xff]  ;;  %v1553_v37 = vmov 14  }
  0xf9   :  { %v206_v35 = vadd.f32 %v195_v34, %v186_v32  ;;  %v168_v16 = vmax.f32 %v162_v15, 0.0  ;;  %490 = vperm.xlu1 %1458, %v1644_v14   ;;  %494 = vperm.xlu0 %1459, %v1631_v9   ;;  %v1367_v32 = vpack.c.bf16 %v647_v31, %v646_v30  ;;  %v649_v34 = vld [vmem:[%s1809_s3 + $0x18] sm:$0xff] }
  0xfa   :  { %v167_v54 = vmax.f32 %v157_v51, 0.0  ;;  %v205_v1 = vadd.f32 %v191_v62, %v185_v59  ;;  %v488_v62 = vld [vmem:[#allocation2 + $0x98] sm:$0xff] }
  0xfb   :  { %1249 = vmatpush3.msra.mxu1 %v206_v35  ;;  %v188_v21 = vmul.f32 %v183_v42, %v168_v16  ;;  %v1371_v35 = vpack.c.bf16 %v649_v34, %v648_v33  ;;  %v653_v42 = vld [vmem:[%s1809_s3 + $0x38] sm:$0xff] }
  0xfc   :  { %1251 = vmatmul.mubr.msk.f32.vlgmr.msra.gmra.mrb[0].mxu1 %vm217_vm2, %v210_v36  ;;  %1253 = vmatprep.subr.mxu1 %v1547_v24  ;;  %v187_v60 = vmul.f32 %v179_v43, %v167_v54  ;;  %v1552_v36 = vmov 13   ;;  %v654_v43 = vld [vmem:[%s1809_s3 + $0x40] sm:$0xff]  ;;  %v476_v54 = vpop.permute.xlu0 %475 }
  0xfd   :  { %1255 = vmatprep.mubr.msk.f32.mxu1 %vm1548_vm1, %v1547_v24  ;;  %v208_v25 = vadd.f32 %v203_v49, %v188_v21  ;;  %498 = vperm.xlu1 %1458, %v1638_v10  }
  0xfe   :  { %v207_v0 = vadd.f32 %v199_v45, %v187_v60  ;;  %502 = vperm.xlu0 %1459, %v1660_v20   ;;  %v655_v45 = vld [vmem:[%s1809_s3 + $0x48] sm:$0xff] }
  0xff   :  { %v486_v60 = vld [vmem:[#allocation2 + $0x88] sm:$0xff] }
 0x101   :  { %1460 = vset.pattern.permute.xlu1 %v1552_v36 }
 0x102   :  { %1461 = vset.pattern.permute.xlu0 %v1553_v37  ;;  %607 = vperm.xlu1 %1460, %v1644_v14  }
 0x103   :  { %627 = vperm.xlu0 %1461, %v1644_v14  }
 0x106   :  { %611 = vperm.xlu1 %1460, %v1631_v9  }
 0x107   :  { %1464 = vset.pattern.permute.xlu0 %v1552_v36 }
 0x108   :  { %619 = vperm.xlu0 %1464, %v1660_v20  }
 0x10a   :  { %1462 = vset.pattern.permute.xlu1 %v1553_v37 }
 0x10b   :  { %631 = vperm.xlu1 %1462, %v1631_v9  }
 0x10f   :  { %1463 = vset.pattern.permute.xlu1 %v1552_v36 }
 0x110   :  { %615 = vperm.xlu1 %1463, %v1638_v10  }
 0x114   :  { %1465 = vset.pattern.permute.xlu1 %v1553_v37 }
 0x115   :  { %635 = vperm.xlu1 %1465, %v1638_v10  }
 0x119   :  { %639 = vperm.xlu1 %1465, %v1660_v20  }
 0x178   :  { %v495_v15 = vpop.permute.xlu0 %494 }
 0x1cf   :  { %v287_v56 = vpop.f32.mrb[0].mxu1 }
 0x1d0   :  { %v288_v57 = vadd.f32 %v287_v56, %v215_v38  ;;  %v1252_v58 = vpop.f32.mrb[1].mxu1  ;;  %v650_v38 = vld [vmem:[%s1809_s3 + $0x20] sm:$0xff]  ;;  %v481_v56 = vpop.permute.xlu1 %480 }
 0x1d2   :  { %v291_v61 = vmax.f32 %v288_v57, 0.0 }
 0x1d4   :  { %v296_v63 = vmul.f32 %v294_v39, %v291_v61  ;;  %v651_v39 = vld [vmem:[%s1809_s3 + $0x28] sm:$0xff]  ;;  %v487_v61 = vld [vmem:[#allocation2 + $0x90] sm:$0xff] }
 0x1d6   :  { %v301_v5 = vadd.f32 %v299_v40, %v296_v63  ;;  %v1375_v40 = vpack.c.bf16 %v651_v39, %v650_v38  ;;  %v659_v63 = vld [vmem:[%s1809_s3 + $0x68] sm:$0xff] }
 0x1d8   :  { %v302_v7 = vadd.f32 %v301_v5, %v207_v0  ;;  %v1359_v8 = vpack.c.bf16 %v301_v5, %v205_v1  ;;  %v660_v1 = vld [vmem:[%s1809_s3 + $0x70] sm:$0xff]  ;;  %v661_v5 = vld [vmem:[%s1809_s3 + $0x78] sm:$0xff] }
 0x1da   :  { %1254 = vmatpush3.msra.mxu1 %v302_v7  ;;  %1360 = vmatprep.subr.bf16.mxu0 %v1359_v8  ;;  %v1395_v7 = vpack.c.bf16 %v661_v5, %v660_v1 }
 0x1db   :  { %1256 = vmatmul.mubr.msk.f32.vlgmr.msra.gmra.mrb[2].mxu1 %vm217_vm2, %v304_v11  ;;  %1362 = vmatpush3.bf16.msra.mxu0 %v1359_v8  ;;  %v491_v8 = vpop.permute.xlu1 %490 }
 0x1dc   :  { %1258 = vmatprep.subr.mxu1 %v1547_v24  ;;  %1260 = vmatprep.mubr.msk.f32.mxu1 %vm1548_vm1, %v1547_v24 }
 0x1df   :  { %v499_v11 = vpop.permute.xlu1 %498 }
 0x1e3   :  { %v608_v12 = vpop.permute.xlu1 %607 }
 0x1e7   :  { %v612_v13 = vpop.permute.xlu1 %611 }
 0x1eb   :  { %v632_v16 = vpop.permute.xlu1 %631 }
 0x2ae   :  { %v378_v17 = vpop.f32.mrb[2].mxu1 }
 0x2af   :  { %v379_v18 = vadd.f32 %v378_v17, %v307_v47  ;;  %v1257_v19 = vpop.f32.mrb[3].mxu1  ;;  %v656_v47 = vld [vmem:[%s1809_s3 + $0x50] sm:$0xff]  ;;  %v503_v17 = vpop.permute.xlu0 %502 }
 0x2b0   :  { %v1387_v49 = vpack.c.bf16 %v657_v48, %v656_v47 }
 0x2b1   :  { %v382_v22 = vmax.f32 %v379_v18, 0.0  ;;  %v616_v18 = vpop.permute.xlu1 %615 }
 0x2b3   :  { %v387_v23 = vmul.f32 %v385_v44, %v382_v22  ;;  %v1379_v44 = vpack.c.bf16 %v653_v42, %v652_v41  ;;  %v628_v21 = vpop.permute.xlu0 %627 }
 0x2b5   :  { %v1682_v26 = vadd.f32 %v390_v46, %v387_v23  ;;  %v1383_v46 = vpack.c.bf16 %v655_v45, %v654_v43  ;;  %v636_v33 = vpop.permute.xlu1 %635  ;;  %v1554_v45 = vmov 15  }
 0x2b6   :  { %1466 = vset.pattern.permute.xlu0 %v1554_v45  ;;  %1467 = vset.pattern.permute.xlu1 %v1554_v45 }
 0x2b7   :  { %v393_v24 = vadd.f32 %v1682_v26, %v208_v25  ;;  %v620_v34 = vpop.permute.xlu0 %619  ;;  %753 = vperm.xlu0 %1466, %v1644_v14   ;;  %757 = vperm.xlu1 %1467, %v1631_v9  }
 0x2b9   :  { %1259 = vmatpush3.msra.mxu1 %v393_v24  ;;  %v640_v42 = vpop.permute.xlu1 %639 }
 0x2ba   :  { %1261 = vmatmul.mubr.msk.f32.vlgmr.msra.gmra.mrb[4].mxu1 %vm217_vm2, %v395_v27  ;;  %1368 = vmatprep.subr.bf16.mxu1 %v1367_v32 }
 0x2bb   :  { %1370 = vmatpush3.bf16.msra.mxu1 %v1367_v32  ;;  %765 = vperm.xlu0 %1466, %v1660_v20  }
 0x2bc   :  { %1372 = vmatprep.subr.bf16.mxu1 %v1371_v35  ;;  %761 = vperm.xlu1 %1467, %v1638_v10  }
 0x2bf   :  { %1374 = vmatpush3.bf16.msra.mxu1 %v1371_v35 }
 0x2c0   :  { %1376 = vmatprep.subr.bf16.mxu1 %v1375_v40 }
 0x2c3   :  { %1378 = vmatpush3.bf16.msra.mxu1 %v1375_v40 }
 0x2c4   :  { %1380 = vmatprep.subr.bf16.mxu1 %v1379_v44 }
 0x2c7   :  { %1382 = vmatpush3.bf16.msra.mxu1 %v1379_v44  ;;  %v748_v44 = vld [vmem:[#allocation2 + $0xa0] sm:$0xff] }
 0x2c8   :  { %1384 = vmatprep.subr.bf16.mxu1 %v1383_v46 }
 0x2cb   :  { %1386 = vmatpush3.bf16.msra.mxu1 %v1383_v46 }
 0x2cc   :  { %1388 = vmatprep.subr.bf16.mxu1 %v1387_v49 }
 0x2cf   :  { %1390 = vmatpush3.bf16.msra.mxu1 %v1387_v49 }
 0x38d   :  { %v469_v50 = vpop.f32.mrb[4].mxu1 }
 0x38e   :  { %v470_v51 = vadd.f32 %v469_v50, %v1676_v52  ;;  %v1262_v53 = vpop.f32.mrb[5].mxu1  ;;  %v658_v52 = vld [vmem:[%s1809_s3 + $0x60] sm:$0xff] }
 0x38f   :  { %v1391_v0 = vpack.c.bf16 %v659_v63, %v658_v52  ;;  %v749_v53 = vld [vmem:[#allocation2 + $0xa8] sm:$0xff] }
 0x390   :  { %v473_v55 = vmax.f32 %v470_v51, 0.0 }
 0x391   :  { %1392 = vmatprep.subr.bf16.mxu1 %v1391_v0 }
 0x392   :  { %v478_v57 = vmul.f32 %v476_v54, %v473_v55  ;;  %1394 = vmatpush3.bf16.msra.mxu1 %v1391_v0  ;;  %v750_v54 = vld [vmem:[#allocation2 + $0xb0] sm:$0xff]  ;;  %v751_v55 = vld [vmem:[#allocation2 + $0xb8] sm:$0xff] }
 0x393   :  { %1396 = vmatprep.subr.bf16.mxu1 %v1395_v7 }
 0x394   :  { %v483_v58 = vadd.f32 %v481_v56, %v478_v57  ;;  %v870_v56 = vld [vmem:[#allocation2 + $0xc0] sm:$0xff]  ;;  %v1555_v57 = vmov 16  }
 0x395   :  { %1468 = vset.pattern.permute.xlu1 %v1555_v57  ;;  %1469 = vset.pattern.permute.xlu0 %v1555_v57 }
 0x396   :  { %v1363_v59 = vpack.c.bf16 %v483_v58, %v1682_v26  ;;  %1398 = vmatpush3.bf16.msra.mxu1 %v1395_v7  ;;  %875 = vperm.xlu1 %1468, %v1644_v14   ;;  %v754_v58 = vpop.permute.xlu0 %753 }
 0x397   :  { %879 = vperm.xlu0 %1469, %v1631_v9  }
 0x398   :  { %1364 = vmatprep.subr.bf16.mxu0 %v1363_v59 }
 0x399   :  { %1366 = vmatpush3.bf16.msra.mxu0 %v1363_v59  ;;  %v758_v59 = vpop.permute.xlu1 %757 }
 0x39a   :  { %883 = vperm.xlu1 %1468, %v1638_v10   ;;  %v766_v1 = vpop.permute.xlu0 %765 }
 0x39c   :  { %1272 = vmatmul.mubr.msk.f32.vlgmr.msra.gmra.mrb[4].mxu0 %vm67_vm0, %v486_v60 }
 0x39d   :  { %1274 = vmatprep.mubr.msk.f32.mxu0 %vm67_vm0, %v487_v61  ;;  %v762_v7 = vpop.permute.xlu1 %761 }
 0x39e   :  { %887 = vperm.xlu1 %1468, %v1660_v20   ;;  %v871_v20 = vld [vmem:[#allocation2 + $0xc8] sm:$0xff] }
 0x3a0   :  { %1275 = vmatmul.mubr.msk.f32.gmra.mrb[6].mxu0 %vm67_vm0, %v488_v62 }
 0x3a1   :  { %1323 = vmatprep.mubr.msk.f32.mxu0 %vm67_vm0, %v748_v44 }
 0x46f   :  { %v1273_v19 = vpop.f32.mrb[4].mxu0 }
 0x470   :  { %v589_v22 = vadd.f32 %v1273_v19, %v495_v15  ;;  %v583_v23 = vpop.f32.mrb[5].mxu0  ;;  %v872_v15 = vld [vmem:[#allocation2 + $0xd0] sm:$0xff] }
 0x471   :  { %v584_v25 = vadd.f32 %v583_v23, %v491_v8 }
 0x472   :  { %v603_v26 = vmax.f32 %v589_v22, 0.0 }
 0x473   :  { %v602_v24 = vmax.f32 %v584_v25, 0.0  ;;  %v1276_v27 = vpop.f32.mrb[6].mxu0 }
 0x474   :  { %v623_v28 = vmul.f32 %v612_v13, %v603_v26  ;;  %v599_v29 = vadd.f32 %v1276_v27, %v503_v17  ;;  %v593_v30 = vpop.f32.mrb[7].mxu0  ;;  %v1011_v17 = vld [vmem:[%s1810_s4] sm:$0x3]  ;;  %s1556_s4 = smov [#allocation5]  }
 0x475   :  { %v622_v31 = vmul.f32 %v608_v12, %v602_v24  ;;  %v594_v32 = vadd.f32 %v593_v30, %v499_v11  ;;  %s1131_s27 = sshll.u32 %s1556_s4, 4  ;;  %s1132_s27 = int_to_ptr.vmem [resolvable:$true] %s1131_s27 }
 0x476   :  { %v605_v35 = vmax.f32 %v599_v29, 0.0  ;;  %v1754_v38 = vadd.f32 %v632_v16, %v623_v28  ;;  %v873_v16 = vld [vmem:[#allocation2 + $0xd8] sm:$0xff]  ;;  %s1508_s30 = scalar_lea.vmem %s1132_s27, 512  ;;  %p1513_p9 = scmp.lt.s32.totalorder %s1132_s27, %s1132_s27 }
 0x477   :  { %v1752_v36 = vadd.f32 %v628_v21, %v622_v31  ;;  %v604_v37 = vmax.f32 %v594_v32, 0.0  ;;  %v880_v21 = vpop.permute.xlu0 %879  ;;  %p1509_p8 = scmp.ne.s32.totalorder %s1132_s27, %s1508_s30  ;;  %p1514_p10 = scmp.lt.s32.totalorder %s1508_s30, %s1508_s30 }
 0x478   :  { %v625_v39 = vmul.f32 %v620_v34, %v605_v35 }
 0x479   :  { %v624_v40 = vmul.f32 %v616_v18, %v604_v37  ;;  %1309 = vmatprep.mubr.f32.mxu1 %v1752_v36  ;;  %v876_v18 = vpop.permute.xlu1 %875  ;;  %p1515_p11 = por %p1514_p10, %p1513_p9 }
 0x47a   :  { %1310 = vmatmul.mubr.f32.vlgmr.msra.gmra.mrb[6].mxu1 %v1754_v38  ;;  %v1760_v43 = vadd.f32 %v640_v42, %v625_v39 }
 0x47b   :  { %v1758_v41 = vadd.f32 %v636_v33, %v624_v40  ;;  %p1516_p12 = pnand %p1515_p11, %p1509_p8 }
 0x47d   :  { %1312 = vmatprep.mubr.f32.mxu1 %v1758_v41  ;;  %v884_v19 = vpop.permute.xlu1 %883 }
 0x47e   :  { %1313 = vmatmul.mubr.f32.gmra.mrb[8].mxu1 %v1760_v43 }
 0x481   :  { %v888_v27 = vpop.permute.xlu1 %887 }
 0x54d   :  { %v1311_v46 = vpop.f32.mrb[6].mxu1 }
 0x54e   :  { %v728_v47 = vpop.f32.mrb[7].mxu1 }
 0x54f   :  { %v1399_v48 = vpack.c.bf16 %v1311_v46, %v728_v47 }
 0x551   :  { %v1314_v49 = vpop.f32.mrb[8].mxu1  ;;  %1400 = vmatprep.subr.bf16.mxu0 %v1399_v48 }
 0x552   :  { %v738_v50 = vpop.f32.mrb[9].mxu1  ;;  %1402 = vmatpush3.bf16.msra.mxu0 %v1399_v48 }
 0x553   :  { %v1403_v51 = vpack.c.bf16 %v1314_v49, %v738_v50 }
 0x555   :  { %1404 = vmatprep.subr.bf16.mxu0 %v1403_v51 }
 0x556   :  { %1406 = vmatpush3.bf16.msra.mxu0 %v1403_v51 }
 0x559   :  { %1324 = vmatmul.mubr.msk.f32.vlgmr.msra.gmra.mrb[8].mxu0 %vm67_vm0, %v749_v53 }
 0x55a   :  { %1326 = vmatprep.mubr.msk.f32.mxu0 %vm67_vm0, %v750_v54 }
 0x55d   :  { %1327 = vmatmul.mubr.msk.f32.gmra.mrb[10].mxu0 %vm67_vm0, %v751_v55 }
 0x55e   :  { %1337 = vmatprep.mubr.msk.f32.mxu0 %vm67_vm0, %v870_v56 }
 0x62c   :  { %v1325_v60 = vpop.f32.mrb[8].mxu0 }
 0x62d   :  { %v852_v61 = vadd.f32 %v1325_v60, %v758_v59  ;;  %v846_v62 = vpop.f32.mrb[9].mxu0 }
 0x62e   :  { %v847_v52 = vadd.f32 %v846_v62, %v754_v58 }
 0x62f   :  { %v866_v63 = vmax.f32 %v852_v61, 0.0 }
 0x630   :  { %v865_v0 = vmax.f32 %v847_v52, 0.0  ;;  %v1328_v5 = vpop.f32.mrb[10].mxu0 }
 0x631   :  { %v862_v8 = vadd.f32 %v1328_v5, %v766_v1  ;;  %v856_v11 = vpop.f32.mrb[11].mxu0 }
 0x632   :  { %v1407_v14 = vpack.c.bf16 %v866_v63, %v865_v0  ;;  %v857_v12 = vadd.f32 %v856_v11, %v762_v7 }
 0x633   :  { %v868_v9 = vmax.f32 %v862_v8, 0.0 }
 0x634   :  { %v867_v13 = vmax.f32 %v857_v12, 0.0  ;;  %1408 = vmatprep.subr.bf16.mxu0 %v1407_v14 }
 0x635   :  { %1410 = vmatpush3.bf16.msra.mxu0 %v1407_v14 }
 0x636   :  { %v1411_v10 = vpack.c.bf16 %v868_v9, %v867_v13 }
 0x638   :  { %1412 = vmatprep.subr.bf16.mxu0 %v1411_v10 }
 0x639   :  { %1414 = vmatpush3.bf16.msra.mxu0 %v1411_v10 }
 0x63a   :  { %1343 = vmatprep.subr.msk.mxu0 %vm1025_vm3, %v1011_v17 }
 0x63c   :  { %1338 = vmatmul.mubr.msk.f32.vlgmr.msra.gmra.mrb[12].mxu0 %vm67_vm0, %v871_v20 }
 0x63d   :  { %1340 = vmatprep.mubr.msk.f32.mxu0 %vm67_vm0, %v872_v15  ;;  %1344 = vmatpush3.msk.msra.mxu0 %vm1025_vm3, %v1011_v17 }
 0x640   :  { %1341 = vmatmul.mubr.msk.f32.gmra.mrb[14].mxu0 %vm67_vm0, %v873_v16 }
 0x70f   :  { %v1339_v22 = vpop.f32.mrb[12].mxu0 }
 0x710   :  { %v968_v23 = vpop.f32.mrb[13].mxu0  ;;  %v974_v25 = vadd.f32 %v1339_v22, %v880_v21 }
 0x711   :  { %v969_v26 = vadd.f32 %v968_v23, %v876_v18 }
 0x712   :  { %v1163_v24 = vmul.f32 -1.442695, %v974_v25 }
 0x713   :  { %v1162_v28 = vmul.f32 -1.442695, %v969_v26  ;;  %v1342_v29 = vpop.f32.mrb[14].mxu0 }
 0x714   :  { %1470 = vpow2.f32 %v1163_v24  ;;  %v984_v30 = vadd.f32 %v1342_v29, %v888_v27  ;;  %v978_v31 = vpop.f32.mrb[15].mxu0 }
 0x715   :  { %1472 = vpow2.f32 %v1162_v28  ;;  %v979_v32 = vadd.f32 %v978_v31, %v884_v19 }
 0x716   :  { %v1165_v33 = vmul.f32 -1.442695, %v984_v30 }
 0x717   :  { %v1164_v34 = vmul.f32 -1.442695, %v979_v32 }
 0x718   :  { %1474 = vpow2.f32 %v1165_v33 }
 0x719   :  { %1476 = vpow2.f32 %v1164_v34 }
 0x71e   :  { %v1471_v35 = vpop.eup %1470 }
 0x71f   :  { %v1473_v37 = vpop.eup %1472  ;;  %v1000_v39 = vadd.f32 1.0, %v1471_v35 }
 0x720   :  { %v999_v40 = vadd.f32 1.0, %v1473_v37 }
 0x722   :  { %v1475_v42 = vpop.eup %1474  ;;  %1478 = vrcp.f32 %v999_v40 }
 0x723   :  { %v1477_v44 = vpop.eup %1476  ;;  %1480 = vrcp.f32 %v1000_v39  ;;  %v1002_v45 = vadd.f32 1.0, %v1475_v42 }
 0x724   :  { %v1001_v46 = vadd.f32 1.0, %v1477_v44 }
 0x726   :  { %1482 = vrcp.f32 %v1001_v46 }
 0x727   :  { %1484 = vrcp.f32 %v1002_v45 }
 0x72c   :  { %v1479_v47 = vpop.eup %1478 }
 0x72d   :  { %v1481_v48 = vpop.eup %1480  ;;  %1345 = vmatprep.mubr.msk.f32.mxu0 %vm1012_vm4, %v1479_v47 }
 0x72e   :  { %1346 = vmatmul.mubr.msk.f32.vlgmr.msra.gmra.mrb[16].mxu0 %vm1012_vm4, %v1481_v48 }
 0x730   :  { %v1483_v49 = vpop.eup %1482 }
 0x731   :  { %v1485_v50 = vpop.eup %1484  ;;  %1348 = vmatprep.mubr.msk.f32.mxu0 %vm1012_vm4, %v1483_v49 }
 0x732   :  { %1349 = vmatmul.mubr.msk.f32.gmra.mrb[18].mxu0 %vm1012_vm4, %v1485_v50 }
 0x801   :  { %v1347_v51 = vpop.f32.mrb[16].mxu0 }
 0x802   :  { %v1115_v53 = vmul.f32 %v1347_v51, %v1754_v38  ;;  %v1095_v54 = vpop.f32.mrb[17].mxu0 }
 0x803   :  { %v1114_v55 = vmul.f32 %v1095_v54, %v1752_v36 }
 0x804   :  { %v1119_v56 = vadd.f32 %v1115_v53, %v1611_v3 }
 0x805   :  { %v1118_v57 = vadd.f32 %v1114_v55, %v1606_v2  ;;  %v1350_v58 = vpop.f32.mrb[18].mxu0 }
 0x806   :  { %1123 = vst [vmem:[#allocation5 + $0x8] sm:$0xff] %v1119_v56  ;;  %v1117_v59 = vmul.f32 %v1350_v58, %v1760_v43  ;;  %v1105_v60 = vpop.f32.mrb[19].mxu0 }
 0x807   :  { %1122 = vst [vmem:[#allocation5] sm:$0xff] %v1118_v57  ;;  %v1116_v61 = vmul.f32 %v1105_v60, %v1758_v41 }
 0x808   :  { %v1121_v62 = vadd.f32 %v1117_v59, %v1623_v6 }
 0x809   :  { %v1120_v38 = vadd.f32 %v1116_v61, %v1616_v4 }
 0x80a   :  { %1125 = vst [vmem:[#allocation5 + $0x18] sm:$0xff] %v1121_v62 }
 0x80b   :  { %1124 = vst [vmem:[#allocation5 + $0x10] sm:$0xff] %v1120_v38 }
 0x80c   :  { %1519 = shalt.err (!%p1516_p12)
}
 0x80d   :  { %s1520_s8 = scalar_lea.hbm %s1811_s5, 512 }
 0x80e   :  { %p1521_p13 = scmp.ne.s32.totalorder %s1811_s5, %s1520_s8  ;;  %p1524_p0 = scmp.lt.u32.totalorder %s1520_s8, %s1811_s5 }
 0x810   :  { %p1526_p1 = pnand %p1524_p0, %p1521_p13 }
 0x812   :  { %1529 = shalt.err (!%p1526_p1)
}
 0x813   :  { %1137 = dma.vmem_to_hbm [thread:$0]  %s1132_s27, 512, %s1811_s5, [#allocation4], %s1535_s28, %s1535_s28, %s1536_s29  }
 0x814   :  { %1532 = dma.done.wait [#allocation4], 512  }
 0x815   :  { %1533 = vsyncadd [#allocation4], 4294966784 }
 0x816   :  { %1141 = vsyncpa [#allocation3], 1 }
 0x817   :  { %1142 = vsyncpa [#allocation4], 1 }

</bundles_post_ra>
